<compile_context>
chip_gen: v6e
topology: v6e:2x2x1
jax: 0.10.0
libtpu: 0.0.40
codegen_flags: <defaults>
</compile_context>

<pallas_src>
import functools

import jax
import jax.numpy as jnp
from jax import lax
from jax.experimental import pallas as pl
from jax.experimental.pallas import tpu as pltpu


# --------------------------------------------------------------------------
# Helpers
# --------------------------------------------------------------------------
def _round_up(x, m):
    return (x + m - 1) // m * m


def _pad2(a, rows, cols):
    pr, pc = rows - a.shape[0], cols - a.shape[1]
    if pr == 0 and pc == 0:
        return a
    return jnp.pad(a, ((0, pr), (0, pc)))


def _sublane_multiple(dtype):
    # Sub-32-bit dtypes pack along sublanes: f32 -> 8, bf16 -> 16, int8/fp8 -> 32.
    return max(8, 32 // jnp.dtype(dtype).itemsize)


def _vmem_budget():
    """Generation-aware VMEM sizing.

    Returns (tile_working_set_budget_bytes, vmem_limit_bytes).
    v7x has 64 MiB VMEM per TensorCore; v5e/v6e have 128 MiB.
    """
    phys = 64 * 1024 * 1024  # conservative default (v7x)
    try:
        info = pltpu.get_tpu_info()
        phys = int(getattr(info, "vmem_capacity_bytes", phys)) or phys
    except Exception:
        pass
    limit = min(phys * 7 // 8, 100 * 1024 * 1024)
    budget = int(limit * 0.8)  # leave headroom for compiler scratch
    return budget, limit


_TN_CANDS = (1024, 512, 256, 128)
_TK_CANDS = (2048, 1024, 512, 256, 128)


def _select_tiles(D, C, x_dtype, out_dtype, budget, tm_max):
    """Pick (tn, tk): biggest 128/256-aligned tiles that fit the VMEM budget
    without inflating the padded dims by more than 1/8."""
    it_in = jnp.dtype(x_dtype).itemsize
    it_out = jnp.dtype(out_dtype).itemsize
    Dpad, Cpad = _round_up(D, 128), _round_up(C, 128)

    def ws(tn, tk):
        # Worst-case double-buffered pipeline working set + f32 accumulator.
        return (2 * tm_max * tk * it_in          # x tiles
                + 2 * tk * tn * it_in            # W^T tiles
                + 2 * tn * 4                     # bias
                + 2 * tm_max * tn * it_out       # output tiles
                + tm_max * tn * 4)               # f32 accumulator

    def waste_ok(dim, t):
        return t >= dim or (_round_up(dim, t) - dim) * 8 <= dim

    tk_cands = sorted({min(c, Dpad) for c in _TK_CANDS}, reverse=True)
    tn_cands = sorted({min(c, Cpad) for c in _TN_CANDS}, reverse=True)
    tn, tk = tn_cands[-1], tk_cands[-1]

    found = False
    for tk_c in tk_cands:
        if not waste_ok(Dpad, tk_c):
            continue
        for tn_c in tn_cands:
            if waste_ok(Cpad, tn_c) and ws(tn_c, tk_c) <= budget:
                tn, tk = tn_c, tk_c
                found = True
                break
        if found:
            break

    # v7x has 2 TensorCores sharded over the "parallel" grid axes: make sure
    # the class axis has >= 2 blocks when C allows it (costs only an extra x
    # pass, which is small next to the vocab-sized weight for classifier heads).
    if tn >= Cpad and Cpad >= 256:
        tn = _round_up((Cpad + 1) // 2, 128)
    return tn, tk


def _pick_tm(B, sub, tm_max):
    Bpad = _round_up(B, sub)
    if Bpad <= tm_max:
        return Bpad  # full batch: W is streamed from HBM exactly once
    best, best_waste = tm_max, None
    for cand in (1024, 768, 512, 384, 256):
        if cand > tm_max:
            continue
        waste = _round_up(Bpad, cand) - Bpad
        if best_waste is None or waste < best_waste:
            best, best_waste = cand, waste
    return best


# --------------------------------------------------------------------------
# Kernels
# --------------------------------------------------------------------------
def _linear_small_kernel(x_ref, wt_ref, b_ref, o_ref, *, precision):
    # Whole problem in VMEM: x (Bp, Dp) @ wt (Dp, Cp) + b (1, Cp) f32.
    acc = jnp.dot(x_ref[...], wt_ref[...],
                  preferred_element_type=jnp.float32, precision=precision)
    o_ref[...] = (acc + b_ref[...]).astype(o_ref.dtype)


def _linear_tiled_kernel_f32(x_ref, wt_ref, b_ref, o_ref, *, precision):
    # f32 output: accumulate directly into the k-resident output tile.
    k = pl.program_id(2)

    @pl.when(k == 0)
    def _():
        o_ref[...] = jnp.broadcast_to(b_ref[...], o_ref.shape)

    o_ref[...] += jnp.dot(x_ref[...], wt_ref[...],
                          preferred_element_type=jnp.float32, precision=precision)


def _linear_tiled_kernel_acc(x_ref, wt_ref, b_ref, o_ref, acc_ref, *, precision):
    # Non-f32 output: f32 VMEM accumulator, bias folded in once at finalize.
    k = pl.program_id(2)

    @pl.when(k == 0)
    def _():
        acc_ref[...] = jnp.zeros_like(acc_ref)

    acc_ref[...] += jnp.dot(x_ref[...], wt_ref[...],
                            preferred_element_type=jnp.float32, precision=precision)

    @pl.when(k == pl.num_programs(2) - 1)
    def _():
        o_ref[...] = (acc_ref[...] + b_ref[...]).astype(o_ref.dtype)


# --------------------------------------------------------------------------
# Forward implementations
# --------------------------------------------------------------------------
def _small_forward(x, wt_p, b_p, C, *, out_dtype, precision):
    B, _ = x.shape
    Dp, Cp = wt_p.shape
    Bp = _round_up(B, _sublane_multiple(x.dtype))
    x_p = _pad2(x, Bp, Dp)
    out = pl.pallas_call(
        functools.partial(_linear_small_kernel, precision=precision),
        out_shape=jax.ShapeDtypeStruct((Bp, Cp), out_dtype),
    )(x_p, wt_p, b_p)
    return out[:B, :C]


def _tiled_forward(x, wt_p, b_p, C, *, tn, tk, vmem_limit, out_dtype, precision,
                   tm_max=1024):
    B, _ = x.shape
    Dp, Cp = wt_p.shape
    tm = _pick_tm(B, _sublane_multiple(x.dtype), tm_max)
    Bp = _round_up(B, tm)
    x_p = _pad2(x, Bp, Dp)  # only x is padded per call (cheap vs. the weight)

    grid = (Bp // tm, Cp // tn, Dp // tk)
    if jnp.dtype(out_dtype) == jnp.float32:
        kernel = functools.partial(_linear_tiled_kernel_f32, precision=precision)
        scratch = []
    else:
        kernel = functools.partial(_linear_tiled_kernel_acc, precision=precision)
        scratch = [pltpu.VMEM((tm, tn), jnp.float32)]

    out = pl.pallas_call(
        kernel,
        out_shape=jax.ShapeDtypeStruct((Bp, Cp), out_dtype),
        grid_spec=pltpu.PrefetchScalarGridSpec(
            num_scalar_prefetch=0,
            grid=grid,
            in_specs=[
                pl.BlockSpec((tm, tk), lambda i, j, k: (i, k)),   # x tile
                pl.BlockSpec((tk, tn), lambda i, j, k: (k, j)),   # W^T tile (D, C)
                pl.BlockSpec((1, tn), lambda i, j, k: (0, j)),    # bias (f32)
            ],
            out_specs=pl.BlockSpec((tm, tn), lambda i, j, k: (i, j)),
            scratch_shapes=scratch,
        ),
        compiler_params=pltpu.CompilerParams(
            dimension_semantics=("parallel", "parallel", "arbitrary"),
            vmem_limit_bytes=vmem_limit,
        ),
    )(x_p, wt_p, b_p)
    return out[:B, :C]


# --------------------------------------------------------------------------
# Public entry points
# --------------------------------------------------------------------------
def classifier_forward(x, weight, bias, *, precision=None):
    """y = x @ weight.T + bias (torch.nn.Linear semantics).

    Convenience entry point (pads/transposes the weight inside the call).
    For repeated forwards with a large weight, prefer `make_classifier_forward`,
    which does the weight transpose + padding once, outside the jitted forward.
    """
    B, D = x.shape
    C, D2 = weight.shape
    assert D == D2, "input_dim mismatch"
    out_dtype = x.dtype
    it = jnp.dtype(x.dtype).itemsize
    sub = _sublane_multiple(x.dtype)
    Bp, Dp, Cp = _round_up(B, sub), _round_up(D, 128), _round_up(C, 128)
    small_bytes = (Bp * Dp + Dp * Cp + Cp + Bp * Cp) * it
    budget, vmem_limit = _vmem_budget()

    b2d = bias.astype(jnp.float32).reshape(1, C)

    if small_bytes <= 2 * 1024 * 1024:
        # Fast path: whole problem in VMEM, zero grid, lane-dense padding.
        wt_p = _pad2(weight.T, Dp, Cp)
        b_p = _pad2(b2d, 1, Cp)
        return _small_forward(x, wt_p, b_p, C, out_dtype=out_dtype,
                              precision=precision)

    tn, tk = _select_tiles(D, C, x.dtype, out_dtype, budget, tm_max=1024)
    Dp, Cp = _round_up(D, tk), _round_up(C, tn)
    wt_p = _pad2(weight.T, Dp, Cp)
    b_p = _pad2(b2d, 1, Cp)
    return _tiled_forward(x, wt_p, b_p, C, tn=tn, tk=tk, vmem_limit=vmem_limit,
                          out_dtype=out_dtype, precision=precision)


def make_classifier_forward(weight, bias, *, out_dtype=None, precision=None):
    """One-time parameter setup; returns a jitted `forward(x)`.

    The PyTorch (C, D) weight is transposed to (D, C) and padded to tile
    multiples ONCE (here, outside jit), so no per-call HBM copy of W is
    materialized and the kernel contracts with the canonical K-minor layout.
    """
    weight = jnp.asarray(weight)
    bias = jnp.asarray(bias)
    C, D = weight.shape
    out_dtype = jnp.dtype(out_dtype or weight.dtype)
    budget, vmem_limit = _vmem_budget()
    tn, tk = _select_tiles(D, C, weight.dtype, out_dtype, budget, tm_max=1024)
    Dp, Cp = _round_up(D, tk), _round_up(C, tn)
    wt_p = _pad2(weight.T, Dp, Cp)                                   # once
    b_p = _pad2(bias.astype(jnp.float32).reshape(1, C), 1, Cp)       # once

    @jax.jit
    def forward(x):
        return _tiled_forward(x, wt_p, b_p, C, tn=tn, tk=tk,
                              vmem_limit=vmem_limit, out_dtype=out_dtype,
                              precision=precision)

    return forward


# --------------------------------------------------------------------------
# Test
# --------------------------------------------------------------------------
if __name__ == "__main__":
    # Small shapes implied by the module: batch=8, input_dim=32, num_classes=16.
    batch, input_dim, num_classes = 8, 32, 16

    key = jax.random.PRNGKey(0)
    kx, kw, kb = jax.random.split(key, 3)
    x = jax.random.normal(kx, (batch, input_dim), dtype=jnp.float32)
    bound = 1.0 / (input_dim ** 0.5)
    weight = jax.random.uniform(kw, (num_classes, input_dim),
                                minval=-bound, maxval=bound, dtype=jnp.float32)
    bias = jax.random.uniform(kb, (num_classes,),
                              minval=-bound, maxval=bound, dtype=jnp.float32)

    fwd = jax.jit(classifier_forward)
    out = jax.block_until_ready(fwd(x, weight, bias))
    ref = x @ weight.T + bias
    assert out.shape == (batch, num_classes)
    # Default MXU precision is bf16-class; tolerance documents that.
    assert jnp.allclose(out, ref, atol=1e-2, rtol=1e-2), "small-path mismatch"

    # Exercise the tiled path on a classifier-head-like shape, with the
    # one-time-setup entry point (weight transposed/padded outside jit).
    B2, D2, C2 = 512, 1536, 1280
    kx2, kw2, kb2 = jax.random.split(jax.random.PRNGKey(1), 3)
    x2 = jax.random.normal(kx2, (B2, D2), dtype=jnp.float32)
    bound2 = 1.0 / (D2 ** 0.5)
    w2 = jax.random.uniform(kw2, (C2, D2), minval=-bound2, maxval=bound2,
                            dtype=jnp.float32)
    b2 = jax.random.uniform(kb2, (C2,), minval=-bound2, maxval=bound2,
                            dtype=jnp.float32)

    head_fwd = make_classifier_forward(w2, b2)
    out2 = jax.block_until_ready(head_fwd(x2))
    ref2 = jnp.dot(x2, w2.T, precision=lax.Precision.HIGHEST) + b2
    assert out2.shape == (B2, C2)
    assert jnp.allclose(out2, ref2, atol=2e-2, rtol=2e-2), "tiled-path mismatch"

    print("KERNEL_OK")
</pallas_src>

<mosaic_0001>
module attributes {stable_mosaic.version = 11 : i64} {
  func.func @_linear_small_kernel(%arg0: memref<8x128xf32, #tpu.memory_space<vmem>>, %arg1: memref<128x128xf32, #tpu.memory_space<vmem>>, %arg2: memref<1x128xf32, #tpu.memory_space<vmem>>, %arg3: memref<8x128xf32, #tpu.memory_space<vmem>>) attributes {dimension_semantics = [], scalar_prefetch = 0 : i64, scratch_operands = 0 : i64, tpu.core_type = #tpu.core_type<tc>} {
    %c0 = arith.constant 0 : index
    %c0_0 = arith.constant 0 : index
    %0 = vector.load %arg0[%c0, %c0_0] : memref<8x128xf32, #tpu.memory_space<vmem>>, vector<8x128xf32>
    %c0_1 = arith.constant 0 : index
    %c0_2 = arith.constant 0 : index
    %1 = vector.load %arg1[%c0_1, %c0_2] : memref<128x128xf32, #tpu.memory_space<vmem>>, vector<128x128xf32>
    %cst = arith.constant dense<0.000000e+00> : vector<8x128xf32>
    %2 = tpu.matmul %0, %1, %cst {dimension_numbers = #tpu.dot_dimension_numbers<[1], [0], [0], [1], [0, 0, 1, 1], [], []>} : vector<8x128xf32>, vector<128x128xf32>, vector<8x128xf32> -> vector<8x128xf32>
    %c0_3 = arith.constant 0 : index
    %c0_4 = arith.constant 0 : index
    %3 = vector.load %arg2[%c0_3, %c0_4] : memref<1x128xf32, #tpu.memory_space<vmem>>, vector<1x128xf32>
    %4 = vector.broadcast %3 : vector<1x128xf32> to vector<8x128xf32>
    %5 = arith.addf %2, %4 : vector<8x128xf32>
    %c0_5 = arith.constant 0 : index
    %c0_6 = arith.constant 0 : index
    %6 = vector.load %arg3[%c0_5, %c0_6] : memref<8x128xf32, #tpu.memory_space<vmem>>, vector<8x128xf32>
    tpu.vector_store %arg3[%c0_5, %c0_6], %5 {strides = array<i32>} : memref<8x128xf32, #tpu.memory_space<vmem>>, vector<8x128xf32>,
    return
  }
}

</mosaic_0001>

<bundles_post_ra>
// kernel: classifier_forward.1
= control target key start
LH: loop header
LB: loop body
LE: loop exit
PB: predicated region body
PF: predicated region fallthrough
CT: control target
= control target key end

     0   :  { %v202_v1 = vmov 0.0   ;;  %vm203_vm0 = vmmov 0   ;;  %s282_s0 = inlined_call_operand.vmem [shape: f32[8,128], index: 0, kind: input, shape index: {}]   ;;  %s283_s1 = inlined_call_operand.vmem [shape: f32[128,128], index: 1, kind: input, shape index: {}]   ;;  %s284_s2 = inlined_call_operand.vmem [shape: f32[1,128], index: 2, kind: input, shape index: {}]   ;;  %s285_s3 = inlined_call_operand.hbm [shape: f32[8,128], index: 3, kind: output, shape index: {}]  }
   0x1   :  { %v31_v0 = vld [vmem:[%s283_s1 + $0x78] sm:$0xff]  ;;  %142 = vmatprep.subr.mxu0 %v202_v1  ;;  %v30_v2 = vld [vmem:[%s283_s1 + $0x70] sm:$0xff]  ;;  %174 = vmatprep.mubr.msk.f32.mxu0 %vm203_vm0, %v202_v1  ;;  %v29_v3 = vld [vmem:[%s283_s1 + $0x68] sm:$0xff] }
   0x2   :  { %143 = vmatpush3.msra.mxu0 %v31_v0  ;;  %v28_v4 = vld [vmem:[%s283_s1 + $0x60] sm:$0xff] }
   0x3   :  { %144 = vmatprep.subr.mxu0 %v202_v1 }
   0x4   :  { %145 = vmatpush3.msra.mxu0 %v30_v2 }
   0x5   :  { %146 = vmatprep.subr.mxu0 %v202_v1 }
   0x6   :  { %147 = vmatpush3.msra.mxu0 %v29_v3 }
   0x7   :  { %8 = vsyncpa [#allocation3], 0  ;;  %148 = vmatprep.subr.mxu0 %v202_v1  ;;  %v27_v5 = vld [vmem:[%s283_s1 + $0x58] sm:$0xff]  ;;  %v26_v6 = vld [vmem:[%s283_s1 + $0x50] sm:$0xff]  ;;  %s204_s21 = smov [#allocation2]  }
   0x8   :  { %149 = vmatpush3.msra.mxu0 %v28_v4  ;;  %v25_v7 = vld [vmem:[%s283_s1 + $0x48] sm:$0xff]  ;;  %v24_v8 = vld [vmem:[%s283_s1 + $0x40] sm:$0xff]  ;;  %v23_v9 = vld [vmem:[%s283_s1 + $0x38] sm:$0xff]  ;;  %s116_s22 = sshll.u32 %s204_s21, 4  ;;  %s117_s22 = int_to_ptr.vmem [resolvable:$true] %s116_s22 }
   0x9   :  { %150 = vmatprep.subr.mxu0 %v202_v1  ;;  %v22_v10 = vld [vmem:[%s283_s1 + $0x30] sm:$0xff]  ;;  %v21_v11 = vld [vmem:[%s283_s1 + $0x28] sm:$0xff]  ;;  %v20_v12 = vld [vmem:[%s283_s1 + $0x20] sm:$0xff]  ;;  %p185_p1 = scmp.lt.s32.totalorder %s117_s22, %s117_s22 }
   0xa   :  { %151 = vmatpush3.msra.mxu0 %v27_v5  ;;  %v19_v13 = vld [vmem:[%s283_s1 + $0x18] sm:$0xff]  ;;  %v18_v14 = vld [vmem:[%s283_s1 + $0x10] sm:$0xff]  ;;  %v17_v15 = vld [vmem:[%s283_s1 + $0x8] sm:$0xff] }
   0xb   :  { %152 = vmatprep.subr.mxu0 %v202_v1  ;;  %v16_v16 = vld [vmem:[%s283_s1] sm:$0xff]  ;;  %s180_s1 = scalar_lea.vmem %s117_s22, 128 }
   0xc   :  { %153 = vmatpush3.msra.mxu0 %v26_v6  ;;  %v15_v17 = vld [vmem:[%s282_s0] sm:$0xff]  ;;  %p181_p0 = scmp.ne.s32.totalorder %s117_s22, %s180_s1  ;;  %p186_p2 = scmp.lt.s32.totalorder %s180_s1, %s180_s1 }
   0xd   :  { %154 = vmatprep.subr.mxu0 %v202_v1  ;;  %v124_v18 = vld [vmem:[%s284_s2] ss:$0 sm:$0xff] }
   0xe   :  { %155 = vmatpush3.msra.mxu0 %v25_v7  ;;  %p187_p3 = por %p186_p2, %p185_p1 }
   0xf   :  { %156 = vmatprep.subr.mxu0 %v202_v1 }
  0x10   :  { %157 = vmatpush3.msra.mxu0 %v24_v8  ;;  %p188_p4 = pnand %p187_p3, %p181_p0 }
  0x11   :  { %158 = vmatprep.subr.mxu0 %v202_v1 }
  0x12   :  { %159 = vmatpush3.msra.mxu0 %v23_v9 }
  0x13   :  { %160 = vmatprep.subr.mxu0 %v202_v1 }
  0x14   :  { %161 = vmatpush3.msra.mxu0 %v22_v10 }
  0x15   :  { %162 = vmatprep.subr.mxu0 %v202_v1 }
  0x16   :  { %163 = vmatpush3.msra.mxu0 %v21_v11 }
  0x17   :  { %164 = vmatprep.subr.mxu0 %v202_v1 }
  0x18   :  { %165 = vmatpush3.msra.mxu0 %v20_v12 }
  0x19   :  { %166 = vmatprep.subr.mxu0 %v202_v1 }
  0x1a   :  { %167 = vmatpush3.msra.mxu0 %v19_v13 }
  0x1b   :  { %168 = vmatprep.subr.mxu0 %v202_v1 }
  0x1c   :  { %169 = vmatpush3.msra.mxu0 %v18_v14 }
  0x1d   :  { %170 = vmatprep.subr.mxu0 %v202_v1 }
  0x1e   :  { %171 = vmatpush3.msra.mxu0 %v17_v15 }
  0x1f   :  { %172 = vmatprep.subr.mxu0 %v202_v1 }
  0x20   :  { %173 = vmatpush3.msra.mxu0 %v16_v16 }
  0x21   :  { %175 = vmatmul.mubr.f32.vlgmr.msra.gmra.mxu0 %v15_v17 }
  0xe1   :  { %v105_v19 = vpop.f32.mrf.mxu0 }
  0xe2   :  { %v106_v20 = vadd.f32 %v124_v18, %v105_v19 }
  0xe3   :  { %v176_v21 = vpop.f32.mrf.mxu0 }
  0xe4   :  { %109 = vst [vmem:[#allocation2] sm:$0xff] %v106_v20 }
  0xe5   :  { %191 = shalt.err (!%p188_p4)
}
  0xe6   :  { %119 = dma.vmem_to_hbm [thread:$0]  %s117_s22, 128, %s285_s3, [#allocation3]  }
  0xe7   :  { %200 = dma.done.wait [#allocation3], 128  }
  0xe8   :  { %201 = vsyncadd [#allocation3], 4294967168 }
  0xe9   :  { %123 = vsyncpa [#allocation3], 1 }

</bundles_post_ra>
